<compile_context>
chip_gen: v7x
topology: tpu7x:2x2x1
jax: 0.10.0
libtpu: 0.0.40
codegen_flags: <defaults>
</compile_context>

<pallas_src>
import math

import jax
import jax.numpy as jnp
from jax.experimental import pallas as pl
from jax.experimental.pallas import tpu as pltpu


def _round_up(n: int, m: int) -> int:
    return ((n + m - 1) // m) * m


def _device_kind() -> str:
    try:
        return jax.devices()[0].device_kind.lower()
    except Exception:
        return ""


def _feature_align(dim: int, *, is_v5: bool) -> int:
    # v6e/v7x MXUs are 2x256^2: 256-align large dims; v5e (4x128^2) is fed at 128.
    return 256 if (dim >= 512 and not is_v5) else 128


def _choose_tile(dim_p: int, max_tile: int) -> int:
    """Largest multiple of 128 that divides dim_p (a 128-multiple) and <= max_tile."""
    if dim_p <= max_tile:
        return dim_p
    t = (max_tile // 128) * 128
    while t > 128 and dim_p % t:
        t -= 128
    return max(t, 128)


# ---------------------------------------------------------------------------
# Kernel
# ---------------------------------------------------------------------------
def _prompt_mlp_kernel(x_ref, w1_ref, w2_ref, o_ref, acc_ref):
    k = pl.program_id(2)

    @pl.when(k == 0)
    def _():
        acc_ref[...] = jnp.zeros_like(acc_ref)

    # hidden chunk: SiLU(x @ W1[:, k-chunk]) in f32 — bounded to (tm, tk).
    h = jnp.dot(x_ref[...], w1_ref[...], preferred_element_type=jnp.float32)
    h = h * jax.nn.sigmoid(h)  # SiLU / swish
    # accumulate the second matmul over hidden chunks in f32.
    acc_ref[...] += jnp.dot(h.astype(w2_ref.dtype), w2_ref[...],
                            preferred_element_type=jnp.float32)

    @pl.when(k == pl.num_programs(2) - 1)
    def _():
        o_ref[...] = acc_ref[...].astype(o_ref.dtype)


# ---------------------------------------------------------------------------
# Weight preparation (do ONCE at init / load time, not per forward call)
# ---------------------------------------------------------------------------
def prepare_prompt_mlp_weights(w1t, w2t, *, compute_dtype=jnp.bfloat16):
    """Pad feature dims to MXU-friendly multiples and cast once.

    w1t : (in_features, hidden_features)            (= Linear1.weight.T)
    w2t : (hidden_features, out_features*seq_len)   (= Linear2.weight.T)
    Returns (w1_padded, w2_padded) ready for prompt_mlp_forward.
    Zero padding is value-preserving (SiLU(0)=0; padded W2 rows are zero).
    """
    is_v5 = "v5" in _device_kind()
    in_f, hid = w1t.shape
    hid2, out_dim = w2t.shape
    assert hid == hid2, (w1t.shape, w2t.shape)
    in_p = _round_up(in_f, _feature_align(in_f, is_v5=is_v5))
    hid_p = _round_up(hid, _feature_align(hid, is_v5=is_v5))
    out_p = _round_up(out_dim, _feature_align(out_dim, is_v5=is_v5))
    w1 = jnp.pad(w1t.astype(compute_dtype), ((0, in_p - in_f), (0, hid_p - hid)))
    w2 = jnp.pad(w2t.astype(compute_dtype), ((0, hid_p - hid), (0, out_p - out_dim)))
    return w1, w2


# ---------------------------------------------------------------------------
# Forward wrapper
# ---------------------------------------------------------------------------
def prompt_mlp_forward(x, w1_p, w2_p, *, out_features, seq_len=1,
                       is_forward=False, out_dtype=None,
                       block_rows=None, max_hidden_tile=None, max_out_tile=None):
    """Fused PromptMLP forward: SiLU(x @ W1^T) @ W2^T (no bias).

    x          : (bsz, in_features)
    w1_p, w2_p : padded + casted weights from prepare_prompt_mlp_weights.
    """
    bsz, in_f = x.shape
    in_p, hid_p = w1_p.shape
    hid_p2, out_p = w2_p.shape
    assert hid_p == hid_p2, (w1_p.shape, w2_p.shape)
    assert in_f <= in_p, (in_f, in_p)
    out_dim = out_features * seq_len
    assert out_dim <= out_p, (out_dim, out_p)

    compute_dtype = w1_p.dtype
    out_dtype = x.dtype if out_dtype is None else out_dtype
    c_bytes = jnp.dtype(compute_dtype).itemsize
    o_bytes = jnp.dtype(out_dtype).itemsize

    kind = _device_kind()
    is_v7 = "v7" in kind
    # Generation-aware budgets: v7x = 64 MiB physical VMEM, v5e/v6e = 128 MiB.
    vmem_cap = (56 << 20) if is_v7 else (100 << 20)
    headroom = 2 << 20
    if block_rows is None:
        block_rows = 256 if is_v7 else 512
    if max_hidden_tile is None:
        max_hidden_tile = 512 if is_v7 else 1024
    if max_out_tile is None:
        max_out_tile = 1024 if is_v7 else 2048

    # Row tile: multiple of 8; prefer >= 2 batch tiles so both v7x cores work.
    tm = min(block_rows, _round_up(bsz, 8))
    while tm > 8 and pl.cdiv(bsz, tm) < 2:
        tm = max(8, _round_up(tm // 2, 8))

    def _footprint(tm_, tn_, tk_, w1_single, w2_single):
        return (2 * tm_ * in_p * c_bytes                          # x double-buffer
                + (1 if w1_single else 2) * in_p * tk_ * c_bytes  # W1 chunk(s)
                + (1 if w2_single else 2) * tk_ * tn_ * c_bytes   # W2 chunk(s)
                + 2 * tm_ * tn_ * o_bytes                         # out double-buffer
                + tm_ * tn_ * 4                                   # f32 accumulator
                + tm_ * tk_ * 4)                                  # f32 SiLU intermediate

    tk = tn = 128
    w1_single = w2_single = False
    need = 0
    for _ in range(16):
        tk = _choose_tile(hid_p, max_hidden_tile)
        tn = _choose_tile(out_p, max_out_tile)
        grid_k = hid_p // tk
        grid_n = out_p // tn
        w1_single = grid_k == 1                    # constant index map -> resident
        w2_single = grid_k == 1 and grid_n == 1    # constant index map -> resident
        need = _footprint(tm, tn, tk, w1_single, w2_single)
        if need + headroom <= vmem_cap:
            break
        if max_hidden_tile > 128:
            max_hidden_tile = max(128, max_hidden_tile // 2)
        elif max_out_tile > 128:
            max_out_tile = max(128, max_out_tile // 2)
        elif tm > 8:
            tm = max(8, _round_up(tm // 2, 8))
        else:
            break  # smallest tiles; let the compiler have a go anyway

    grid_m = pl.cdiv(bsz, tm)
    grid_n = out_p // tn
    grid_k = hid_p // tk
    vmem_limit = int(min(vmem_cap, max(int(need * 1.25) + headroom, 24 << 20)))

    # Only x's feature dim needs zero padding (it feeds the contraction);
    # the partial last batch tile is handled by Pallas block masking.
    xc = x.astype(compute_dtype)
    if in_p != in_f:
        xc = jnp.pad(xc, ((0, 0), (0, in_p - in_f)))

    cost = pl.CostEstimate(
        flops=2 * bsz * (in_p * hid_p + hid_p * out_p),
        transcendentals=bsz * hid_p,  # exp in SiLU's sigmoid (advisory)
        bytes_accessed=(bsz * in_p + in_p * hid_p + hid_p * out_p) * c_bytes
                       + bsz * out_p * o_bytes,
    )

    def _call(single_w1, single_w2):
        def _wspec(shape, index_map, single):
            if single:
                return pl.BlockSpec(shape, index_map, pipeline_mode=pl.Buffered(1))
            return pl.BlockSpec(shape, index_map)

        return pl.pallas_call(
            _prompt_mlp_kernel,
            out_shape=jax.ShapeDtypeStruct((bsz, out_p), out_dtype),
            grid_spec=pltpu.PrefetchScalarGridSpec(
                num_scalar_prefetch=0,
                grid=(grid_m, grid_n, grid_k),
                in_specs=[
                    pl.BlockSpec((tm, in_p), lambda i, j, k: (i, 0)),     # activations
                    _wspec((in_p, tk), lambda i, j, k: (0, k), single_w1),  # W1^T chunk
                    _wspec((tk, tn), lambda i, j, k: (k, j), single_w2),    # W2^T chunk
                ],
                out_specs=pl.BlockSpec((tm, tn), lambda i, j, k: (i, j)),
                scratch_shapes=[pltpu.VMEM((tm, tn), jnp.float32)],
            ),
            compiler_params=pltpu.CompilerParams(
                dimension_semantics=("parallel", "parallel", "arbitrary"),
                vmem_limit_bytes=vmem_limit,
            ),
            cost_estimate=cost,
        )(xc, w1_p, w2_p)

    if w1_single or w2_single:
        try:
            out_padded = _call(w1_single, w2_single)
        except Exception:
            # Defensive fallback for jax builds without BlockSpec pipeline_mode.
            out_padded = _call(False, False)
    else:
        out_padded = _call(False, False)

    out = out_padded[:, :out_dim]
    if is_forward:
        return out.reshape(bsz, seq_len, out_features)
    return out.reshape(bsz, out_features, seq_len)


# ---------------------------------------------------------------------------
# Plain-JAX reference (same bf16-in / f32-accum numerics as the kernel)
# ---------------------------------------------------------------------------
def prompt_mlp_reference(x, w1t, w2t, *, out_features, seq_len=1, is_forward=False,
                         compute_dtype=jnp.bfloat16):
    bsz = x.shape[0]
    h = jnp.dot(x.astype(compute_dtype), w1t.astype(compute_dtype),
                preferred_element_type=jnp.float32)
    h = h * jax.nn.sigmoid(h)
    out = jnp.dot(h.astype(compute_dtype), w2t.astype(compute_dtype),
                  preferred_element_type=jnp.float32).astype(x.dtype)
    if is_forward:
        return out.reshape(bsz, seq_len, out_features)
    return out.reshape(bsz, out_features, seq_len)


def init_prompt_mlp_params(key, in_features, out_features, hidden_features=8, seq_len=1):
    """Shapes / init matching the PyTorch module (Linear2 weight filled with 0).
    Returned pre-transposed for the kernel: (in, hidden) and (hidden, out*len)."""
    bound = 1.0 / math.sqrt(in_features)
    w1 = jax.random.uniform(
        key, (hidden_features, in_features), jnp.float32, minval=-bound, maxval=bound
    )
    w2 = jnp.zeros((out_features * seq_len, hidden_features), jnp.float32)
    return w1.T, w2.T


# TODO(synk): the dropout forward-hook on the SiLU output (dropout>0, training
# mode) is not implemented; module default is dropout=0.0 so forward matches.

if __name__ == "__main__":
    key = jax.random.PRNGKey(0)
    k_x, k_w1, k_w2, k_x2, k_a, k_b = jax.random.split(key, 6)

    # ---- module-default (tiny) config -------------------------------------
    bsz, in_features, hidden_features, out_features, seq_len = 8, 32, 8, 32, 1
    x = jax.random.normal(k_x, (bsz, in_features), jnp.float32)

    # 1) faithful module init: Linear2 weight zero-filled -> output exactly 0.
    w1t, w2t = init_prompt_mlp_params(k_w1, in_features, out_features,
                                      hidden_features, seq_len)
    w1p, w2p = prepare_prompt_mlp_weights(w1t, w2t)
    out = jax.block_until_ready(
        prompt_mlp_forward(x, w1p, w2p, out_features=out_features,
                           seq_len=seq_len, is_forward=False))
    assert out.shape == (bsz, out_features, seq_len), out.shape
    assert jnp.all(out == 0.0), "zero-init w2 must give exactly-zero output"

    # 2) non-zero w2 (post-training) on the resident / single-buffered path.
    w2t_nz = jax.random.normal(k_w2, (hidden_features, out_features * seq_len),
                               jnp.float32) * 0.1
    w1p2, w2p2 = prepare_prompt_mlp_weights(w1t, w2t_nz)
    out_nz = jax.block_until_ready(
        prompt_mlp_forward(x, w1p2, w2p2, out_features=out_features,
                           seq_len=seq_len, is_forward=False))
    ref_nz = prompt_mlp_reference(x, w1t, w2t_nz, out_features=out_features,
                                  seq_len=seq_len, is_forward=False)
    assert out_nz.shape == (bsz, out_features, seq_len), out_nz.shape
    assert jnp.allclose(out_nz, ref_nz, atol=2e-3, rtol=2e-3), \
        float(jnp.max(jnp.abs(out_nz - ref_nz)))

    # 3) is_forward=True reshape path.
    out_fwd = jax.block_until_ready(
        prompt_mlp_forward(x, w1p2, w2p2, out_features=out_features,
                           seq_len=seq_len, is_forward=True))
    assert out_fwd.shape == (bsz, seq_len, out_features), out_fwd.shape
    assert jnp.allclose(out_fwd.reshape(bsz, -1), out_nz.reshape(bsz, -1), atol=1e-6)

    # 4) small shapes that force the tiled path (grid_m, grid_n, grid_k all > 1):
    #    exercises batch masking, hidden-chunk accumulation and output tiling.
    bsz2, in2, hid2, out2 = 32, 128, 256, 256
    x2 = jax.random.normal(k_x2, (bsz2, in2), jnp.float32)
    w1t2 = jax.random.normal(k_a, (in2, hid2), jnp.float32) * 0.05
    w2t2 = jax.random.normal(k_b, (hid2, out2), jnp.float32) * 0.05
    w1p3, w2p3 = prepare_prompt_mlp_weights(w1t2, w2t2)
    out_t = jax.block_until_ready(
        prompt_mlp_forward(x2, w1p3, w2p3, out_features=out2, seq_len=1,
                           is_forward=False, block_rows=16,
                           max_hidden_tile=128, max_out_tile=128))
    ref_t = prompt_mlp_reference(x2, w1t2, w2t2, out_features=out2, seq_len=1,
                                 is_forward=False)
    assert out_t.shape == ref_t.shape, (out_t.shape, ref_t.shape)
    assert jnp.allclose(out_t, ref_t, atol=5e-3, rtol=5e-3), \
        float(jnp.max(jnp.abs(out_t - ref_t)))

    print("KERNEL_OK")
</pallas_src>

<mosaic_0001>
module attributes {stable_mosaic.version = 11 : i64} {
  func.func @_prompt_mlp_kernel(%arg0: i32, %arg1: i32, %arg2: i32, %arg3: memref<8x128xbf16, #tpu.memory_space<vmem>>, %arg4: memref<128x128xbf16, #tpu.memory_space<vmem>>, %arg5: memref<128x128xbf16, #tpu.memory_space<vmem>>, %arg6: memref<8x128xf32, #tpu.memory_space<vmem>>, %arg7: memref<8x128xf32, #tpu.memory_space<vmem>>) attributes {dimension_semantics = [#tpu.dimension_semantics<parallel>, #tpu.dimension_semantics<parallel>, #tpu.dimension_semantics<arbitrary>], iteration_bounds = array<i64: 1, 1, 1>, scalar_prefetch = 0 : i64, scratch_operands = 1 : i64, tpu.core_type = #tpu.core_type<tc>, window_params = [{transform_indices = @transform_0, window_bounds = array<i64: 8, 128>}, {pipeline_mode = #tpu.pipeline_mode<synchronous>, transform_indices = @transform_1, window_bounds = array<i64: 128, 128>}, {pipeline_mode = #tpu.pipeline_mode<synchronous>, transform_indices = @transform_2, window_bounds = array<i64: 128, 128>}, {transform_indices = @transform_3, window_bounds = array<i64: 8, 128>}]} {
    %c0_i32 = arith.constant 0 : i32
    %0 = arith.cmpi eq, %arg2, %c0_i32 : i32
    %1 = arith.extui %0 : i1 to i32
    %c0_i32_0 = arith.constant 0 : i32
    %2 = arith.cmpi ne, %1, %c0_i32_0 : i32
    scf.if %2 {
      %cst_14 = arith.constant 0.000000e+00 : f32
      %21 = vector.broadcast %cst_14 : f32 to vector<8x128xf32>
      %c0_15 = arith.constant 0 : index
      %c0_16 = arith.constant 0 : index
      %22 = vector.load %arg7[%c0_15, %c0_16] : memref<8x128xf32, #tpu.memory_space<vmem>>, vector<8x128xf32>
      tpu.vector_store %arg7[%c0_15, %c0_16], %21 {strides = array<i32>} : memref<8x128xf32, #tpu.memory_space<vmem>>, vector<8x128xf32>,
    } else {
    }
    %c0 = arith.constant 0 : index
    %c0_1 = arith.constant 0 : index
    %3 = vector.load %arg3[%c0, %c0_1] : memref<8x128xbf16, #tpu.memory_space<vmem>>, vector<8x128xbf16>
    %c0_2 = arith.constant 0 : index
    %c0_3 = arith.constant 0 : index
    %4 = vector.load %arg4[%c0_2, %c0_3] : memref<128x128xbf16, #tpu.memory_space<vmem>>, vector<128x128xbf16>
    %cst = arith.constant dense<0.000000e+00> : vector<8x128xf32>
    %5 = tpu.matmul %3, %4, %cst {dimension_numbers = #tpu.dot_dimension_numbers<[1], [0], [0], [1], [0, 0, 1, 1], [], []>} : vector<8x128xbf16>, vector<128x128xbf16>, vector<8x128xf32> -> vector<8x128xf32>
    %6 = arith.negf %5 : vector<8x128xf32>
    %7 = math.exp %6 : vector<8x128xf32>
    %cst_4 = arith.constant 1.000000e+00 : f32
    %8 = vector.broadcast %cst_4 : f32 to vector<8x128xf32>
    %9 = arith.addf %8, %7 : vector<8x128xf32>
    %10 = arith.divf %8, %9 : vector<8x128xf32>
    %11 = arith.mulf %5, %10 : vector<8x128xf32>
    %c0_5 = arith.constant 0 : index
    %c0_6 = arith.constant 0 : index
    %12 = vector.load %arg7[%c0_5, %c0_6] : memref<8x128xf32, #tpu.memory_space<vmem>>, vector<8x128xf32>
    %13 = arith.truncf %11 : vector<8x128xf32> to vector<8x128xbf16>
    %c0_7 = arith.constant 0 : index
    %c0_8 = arith.constant 0 : index
    %14 = vector.load %arg5[%c0_7, %c0_8] : memref<128x128xbf16, #tpu.memory_space<vmem>>, vector<128x128xbf16>
    %cst_9 = arith.constant dense<0.000000e+00> : vector<8x128xf32>
    %15 = tpu.matmul %13, %14, %cst_9 {dimension_numbers = #tpu.dot_dimension_numbers<[1], [0], [0], [1], [0, 0, 1, 1], [], []>} : vector<8x128xbf16>, vector<128x128xbf16>, vector<8x128xf32> -> vector<8x128xf32>
    %16 = arith.addf %12, %15 : vector<8x128xf32>
    %c0_10 = arith.constant 0 : index
    %c0_11 = arith.constant 0 : index
    %17 = vector.load %arg7[%c0_10, %c0_11] : memref<8x128xf32, #tpu.memory_space<vmem>>, vector<8x128xf32>
    tpu.vector_store %arg7[%c0_10, %c0_11], %16 {strides = array<i32>} : memref<8x128xf32, #tpu.memory_space<vmem>>, vector<8x128xf32>,
    %c0_i32_12 = arith.constant 0 : i32
    %18 = arith.cmpi eq, %arg2, %c0_i32_12 : i32
    %19 = arith.extui %18 : i1 to i32
    %c0_i32_13 = arith.constant 0 : i32
    %20 = arith.cmpi ne, %19, %c0_i32_13 : i32
    scf.if %20 {
      %c0_14 = arith.constant 0 : index
      %c0_15 = arith.constant 0 : index
      %21 = vector.load %arg7[%c0_14, %c0_15] : memref<8x128xf32, #tpu.memory_space<vmem>>, vector<8x128xf32>
      %c0_16 = arith.constant 0 : index
      %c0_17 = arith.constant 0 : index
      %22 = vector.load %arg6[%c0_16, %c0_17] : memref<8x128xf32, #tpu.memory_space<vmem>>, vector<8x128xf32>
      tpu.vector_store %arg6[%c0_16, %c0_17], %21 {strides = array<i32>} : memref<8x128xf32, #tpu.memory_space<vmem>>, vector<8x128xf32>,
    } else {
    }
    return
  }
  func.func @transform_0(%arg0: i32, %arg1: i32, %arg2: i32) -> (i32, i32) {
    %c0_i32 = arith.constant 0 : i32
    %c0_i32_0 = arith.constant 0 : i32
    return %arg0, %c0_i32 : i32, i32
  }
  func.func @transform_1(%arg0: i32, %arg1: i32, %arg2: i32) -> (i32, i32) {
    %c0_i32 = arith.constant 0 : i32
    %c0_i32_0 = arith.constant 0 : i32
    return %c0_i32, %arg2 : i32, i32
  }
  func.func @transform_2(%arg0: i32, %arg1: i32, %arg2: i32) -> (i32, i32) {
    %c0_i32 = arith.constant 0 : i32
    return %arg2, %arg1 : i32, i32
  }
  func.func @transform_3(%arg0: i32, %arg1: i32, %arg2: i32) -> (i32, i32) {
    %c0_i32 = arith.constant 0 : i32
    return %arg0, %arg1 : i32, i32
  }
}

module attributes {stable_mosaic.version = 11 : i64} {
  func.func @_prompt_mlp_kernel(%arg0: i32, %arg1: i32, %arg2: i32, %arg3: memref<8x128xbf16, #tpu.memory_space<vmem>>, %arg4: memref<128x128xbf16, #tpu.memory_space<vmem>>, %arg5: memref<128x128xbf16, #tpu.memory_space<vmem>>, %arg6: memref<8x128xf32, #tpu.memory_space<vmem>>, %arg7: memref<8x128xf32, #tpu.memory_space<vmem>>) attributes {dimension_semantics = [#tpu.dimension_semantics<parallel>, #tpu.dimension_semantics<parallel>, #tpu.dimension_semantics<arbitrary>], iteration_bounds = array<i64: 1, 1, 1>, scalar_prefetch = 0 : i64, scratch_operands = 1 : i64, tpu.core_type = #tpu.core_type<tc>, window_params = [{transform_indices = @transform_0, window_bounds = array<i64: 8, 128>}, {transform_indices = @transform_1, window_bounds = array<i64: 128, 128>}, {transform_indices = @transform_2, window_bounds = array<i64: 128, 128>}, {transform_indices = @transform_3, window_bounds = array<i64: 8, 128>}]} {
    %c0_i32 = arith.constant 0 : i32
    %0 = arith.cmpi eq, %arg2, %c0_i32 : i32
    %1 = arith.extui %0 : i1 to i32
    %c0_i32_0 = arith.constant 0 : i32
    %2 = arith.cmpi ne, %1, %c0_i32_0 : i32
    scf.if %2 {
      %cst_14 = arith.constant 0.000000e+00 : f32
      %21 = vector.broadcast %cst_14 : f32 to vector<8x128xf32>
      %c0_15 = arith.constant 0 : index
      %c0_16 = arith.constant 0 : index
      %22 = vector.load %arg7[%c0_15, %c0_16] : memref<8x128xf32, #tpu.memory_space<vmem>>, vector<8x128xf32>
      tpu.vector_store %arg7[%c0_15, %c0_16], %21 {strides = array<i32>} : memref<8x128xf32, #tpu.memory_space<vmem>>, vector<8x128xf32>,
    } else {
    }
    %c0 = arith.constant 0 : index
    %c0_1 = arith.constant 0 : index
    %3 = vector.load %arg3[%c0, %c0_1] : memref<8x128xbf16, #tpu.memory_space<vmem>>, vector<8x128xbf16>
    %c0_2 = arith.constant 0 : index
    %c0_3 = arith.constant 0 : index
    %4 = vector.load %arg4[%c0_2, %c0_3] : memref<128x128xbf16, #tpu.memory_space<vmem>>, vector<128x128xbf16>
    %cst = arith.constant dense<0.000000e+00> : vector<8x128xf32>
    %5 = tpu.matmul %3, %4, %cst {dimension_numbers = #tpu.dot_dimension_numbers<[1], [0], [0], [1], [0, 0, 1, 1], [], []>} : vector<8x128xbf16>, vector<128x128xbf16>, vector<8x128xf32> -> vector<8x128xf32>
    %6 = arith.negf %5 : vector<8x128xf32>
    %7 = math.exp %6 : vector<8x128xf32>
    %cst_4 = arith.constant 1.000000e+00 : f32
    %8 = vector.broadcast %cst_4 : f32 to vector<8x128xf32>
    %9 = arith.addf %8, %7 : vector<8x128xf32>
    %10 = arith.divf %8, %9 : vector<8x128xf32>
    %11 = arith.mulf %5, %10 : vector<8x128xf32>
    %c0_5 = arith.constant 0 : index
    %c0_6 = arith.constant 0 : index
    %12 = vector.load %arg7[%c0_5, %c0_6] : memref<8x128xf32, #tpu.memory_space<vmem>>, vector<8x128xf32>
    %13 = arith.truncf %11 : vector<8x128xf32> to vector<8x128xbf16>
    %c0_7 = arith.constant 0 : index
    %c0_8 = arith.constant 0 : index
    %14 = vector.load %arg5[%c0_7, %c0_8] : memref<128x128xbf16, #tpu.memory_space<vmem>>, vector<128x128xbf16>
    %cst_9 = arith.constant dense<0.000000e+00> : vector<8x128xf32>
    %15 = tpu.matmul %13, %14, %cst_9 {dimension_numbers = #tpu.dot_dimension_numbers<[1], [0], [0], [1], [0, 0, 1, 1], [], []>} : vector<8x128xbf16>, vector<128x128xbf16>, vector<8x128xf32> -> vector<8x128xf32>
    %16 = arith.addf %12, %15 : vector<8x128xf32>
    %c0_10 = arith.constant 0 : index
    %c0_11 = arith.constant 0 : index
    %17 = vector.load %arg7[%c0_10, %c0_11] : memref<8x128xf32, #tpu.memory_space<vmem>>, vector<8x128xf32>
    tpu.vector_store %arg7[%c0_10, %c0_11], %16 {strides = array<i32>} : memref<8x128xf32, #tpu.memory_space<vmem>>, vector<8x128xf32>,
    %c0_i32_12 = arith.constant 0 : i32
    %18 = arith.cmpi eq, %arg2, %c0_i32_12 : i32
    %19 = arith.extui %18 : i1 to i32
    %c0_i32_13 = arith.constant 0 : i32
    %20 = arith.cmpi ne, %19, %c0_i32_13 : i32
    scf.if %20 {
      %c0_14 = arith.constant 0 : index
      %c0_15 = arith.constant 0 : index
      %21 = vector.load %arg7[%c0_14, %c0_15] : memref<8x128xf32, #tpu.memory_space<vmem>>, vector<8x128xf32>
      %c0_16 = arith.constant 0 : index
      %c0_17 = arith.constant 0 : index
      %22 = vector.load %arg6[%c0_16, %c0_17] : memref<8x128xf32, #tpu.memory_space<vmem>>, vector<8x128xf32>
      tpu.vector_store %arg6[%c0_16, %c0_17], %21 {strides = array<i32>} : memref<8x128xf32, #tpu.memory_space<vmem>>, vector<8x128xf32>,
    } else {
    }
    return
  }
  func.func @transform_0(%arg0: i32, %arg1: i32, %arg2: i32) -> (i32, i32) {
    %c0_i32 = arith.constant 0 : i32
    %c0_i32_0 = arith.constant 0 : i32
    return %arg0, %c0_i32 : i32, i32
  }
  func.func @transform_1(%arg0: i32, %arg1: i32, %arg2: i32) -> (i32, i32) {
    %c0_i32 = arith.constant 0 : i32
    %c0_i32_0 = arith.constant 0 : i32
    return %c0_i32, %arg2 : i32, i32
  }
  func.func @transform_2(%arg0: i32, %arg1: i32, %arg2: i32) -> (i32, i32) {
    %c0_i32 = arith.constant 0 : i32
    return %arg2, %arg1 : i32, i32
  }
  func.func @transform_3(%arg0: i32, %arg1: i32, %arg2: i32) -> (i32, i32) {
    %c0_i32 = arith.constant 0 : i32
    return %arg0, %arg1 : i32, i32
  }
}

</mosaic_0001>

<bundles_post_ra>
// kernel: tpu_custom_call.1
= control target key start
LH: loop header
LB: loop body
LE: loop exit
PB: predicated region body
PF: predicated region fallthrough
CT: control target
= control target key end

     0   :  { %8 = vsyncpa [#allocation4], 0  ;;  %s580_s0 = inlined_call_operand.hbm [shape: bf16[8,128], index: 0, kind: input, shape index: {}]   ;;  %s581_s1 = inlined_call_operand.hbm [shape: bf16[128,128], index: 1, kind: input, shape index: {}]   ;;  %s582_s2 = inlined_call_operand.hbm [shape: bf16[128,128], index: 2, kind: input, shape index: {}]   ;;  %s583_s3 = inlined_call_operand.hbm [shape: f32[8,128], index: 3, kind: output, shape index: {}]  }
   0x1   :  { %9 = vsyncpa [#allocation7], 0 }
   0x2   :  { %10 = vsyncpa [#allocation5], 0  ;;  %s498_s12 = smov [#allocation6]   ;;  %s404_s16 = scalar_lea.hbm %s581_s1, 1024 }
   0x3   :  { %s26_s13 = sshll.u32 %s498_s12, 4  ;;  %p405_p0 = scmp.ne.s32.totalorder %s581_s1, %s404_s16  ;;  %s27_s13 = int_to_ptr.vmem [resolvable:$true] %s26_s13 }
   0x4   :  { %p408_p1 = scmp.lt.u32.totalorder %s404_s16, %s581_s1 }
   0x6   :  { %p410_p2 = pnand %p408_p1, %p405_p0 }
   0x8   :  { %413 = shalt.err (!%p410_p2)
}
   0x9   :  { %s414_s21 = scalar_lea.vmem %s27_s13, 1024  ;;  %p419_p4 = scmp.lt.s32.totalorder %s27_s13, %s27_s13 }
   0xa   :  { %p415_p3 = scmp.ne.s32.totalorder %s27_s13, %s414_s21  ;;  %p420_p5 = scmp.lt.s32.totalorder %s414_s21, %s414_s21 }
   0xc   :  { %p421_p6 = por %p420_p5, %p419_p4 }
   0xe   :  { %p422_p7 = pnand %p421_p6, %p415_p3 }
  0x10   :  { %425 = shalt.err (!%p422_p7)
}
  0x11   :  { %s499_s22 = smov 64   ;;  %s500_s23 = smov 4  }
  0x12   :  { %32 = dma.hbm_to_vmem [thread:$0]  %s581_s1, 1024, %s27_s13, [#allocation7], %s499_s22, %s499_s22, %s500_s23  }
  0x13   :  { %s501_s26 = smov [#allocation3]   ;;  %s502_s28 = smov [#allocation8]  }
  0x14   :  { %s17_s27 = sshll.u32 %s501_s26, 4  ;;  %s38_s29 = sshll.u32 %s502_s28, 4  ;;  %s18_s27 = int_to_ptr.vmem [resolvable:$true] %s17_s27  ;;  %s39_s29 = int_to_ptr.vmem [resolvable:$true] %s38_s29 }
  0x15   :  { %s426_s5 = scalar_lea.hbm %s580_s0, 64 }
  0x16   :  { %p427_p8 = scmp.ne.s32.totalorder %s580_s0, %s426_s5  ;;  %p430_p9 = scmp.lt.u32.totalorder %s426_s5, %s580_s0 }
  0x18   :  { %p432_p10 = pnand %p430_p9, %p427_p8 }
  0x1a   :  { %435 = shalt.err (!%p432_p10)
}
  0x1b   :  { %s436_s1 = scalar_lea.vmem %s18_s27, 64  ;;  %p441_p12 = scmp.lt.s32.totalorder %s18_s27, %s18_s27 }
  0x1c   :  { %p437_p11 = scmp.ne.s32.totalorder %s18_s27, %s436_s1  ;;  %p442_p13 = scmp.lt.s32.totalorder %s436_s1, %s436_s1 }
  0x1e   :  { %p443_p0 = por %p442_p13, %p441_p12 }
  0x20   :  { %p444_p1 = pnand %p443_p0, %p437_p11 }
  0x22   :  { %447 = shalt.err (!%p444_p1)
}
  0x23   :  { %20 = dma.hbm_to_vmem [thread:$0]  %s580_s0, 64, %s18_s27, [#allocation4]  }
  0x24   :  { %s448_s14 = scalar_lea.hbm %s582_s2, 1024 }
  0x25   :  { %p449_p2 = scmp.ne.s32.totalorder %s582_s2, %s448_s14  ;;  %p452_p3 = scmp.lt.u32.totalorder %s448_s14, %s582_s2 }
  0x27   :  { %p454_p4 = pnand %p452_p3, %p449_p2 }
  0x29   :  { %457 = shalt.err (!%p454_p4)
}
  0x2a   :  { %s458_s19 = scalar_lea.vmem %s39_s29, 1024  ;;  %p463_p6 = scmp.lt.s32.totalorder %s39_s29, %s39_s29 }
  0x2b   :  { %p459_p5 = scmp.ne.s32.totalorder %s39_s29, %s458_s19  ;;  %p464_p7 = scmp.lt.s32.totalorder %s458_s19, %s458_s19 }
  0x2d   :  { %p465_p8 = por %p464_p7, %p463_p6 }
  0x2f   :  { %p466_p9 = pnand %p465_p8, %p459_p5 }
  0x31   :  { %469 = shalt.err (!%p466_p9)
}
  0x32   :  { %44 = dma.hbm_to_vmem [thread:$0]  %s582_s2, 1024, %s39_s29, [#allocation7], %s499_s22, %s499_s22, %s500_s23  }
  0x33   :  { %492 = dma.done.wait [#allocation4], 64  }
  0x34   :  { %493 = vsyncadd [#allocation4], 4294967232 }
  0x35   :  { %494 = dma.done.wait [#allocation7], 2048  }
  0x36   :  { %495 = vsyncadd [#allocation7], 4294965248  ;;  %v503_v0 = vmov 0.0   ;;  %vm504_vm0 = vmmov 0   ;;  %v384_v1 = vld [vmem:[#allocation6] sm:$0xff]   ;;  %v385_v2 = vld [vmem:[#allocation6 + $0x8] sm:$0xff]  }
  0x37   :  { %336 = vmatprep.subr.bf16.mxu0 %v503_v0  ;;  %352 = vmatprep.mubr.msk.bf16.mxu0 %vm504_vm0, %v503_v0  ;;  %v386_v3 = vld [vmem:[#allocation6 + $0x10] sm:$0xff]   ;;  %v387_v4 = vld [vmem:[#allocation6 + $0x18] sm:$0xff]   ;;  %v388_v5 = vld [vmem:[#allocation6 + $0x20] sm:$0xff]   ;;  %s505_s2 = smov [#allocation9]  }
  0x38   :  { %356 = vmatprep.subr.bf16.mxu1 %v503_v0  ;;  %372 = vmatprep.mubr.msk.bf16.mxu1 %vm504_vm0, %v503_v0  ;;  %v389_v6 = vld [vmem:[#allocation6 + $0x28] sm:$0xff]   ;;  %v390_v7 = vld [vmem:[#allocation6 + $0x30] sm:$0xff]   ;;  %v391_v8 = vld [vmem:[#allocation6 + $0x38] sm:$0xff]   ;;  %s291_s21 = sshll.u32 %s505_s2, 4  ;;  %s292_s21 = int_to_ptr.vmem [resolvable:$true] %s291_s21 }
  0x39   :  { %337 = vmatpush3.bf16.msra.mxu0 %v384_v1  ;;  %v60_v9 = vld [vmem:[#allocation3] sm:$0xf]  ;;  %v392_v10 = vld [vmem:[#allocation8] sm:$0xff]   ;;  %v393_v11 = vld [vmem:[#allocation8 + $0x8] sm:$0xff]   ;;  %s470_s22 = scalar_lea.vmem %s292_s21, 128  ;;  %p475_p11 = scmp.lt.s32.totalorder %s292_s21, %s292_s21 }
  0x3a   :  { %338 = vmatprep.subr.bf16.mxu0 %v503_v0  ;;  %357 = vmatpush3.bf16.msra.mxu1 %v392_v10  ;;  %v394_v12 = vld [vmem:[#allocation8 + $0x10] sm:$0xff]   ;;  %v395_v13 = vld [vmem:[#allocation8 + $0x18] sm:$0xff]   ;;  %v396_v14 = vld [vmem:[#allocation8 + $0x20] sm:$0xff]   ;;  %p471_p10 = scmp.ne.s32.totalorder %s292_s21, %s470_s22  ;;  %p476_p12 = scmp.lt.s32.totalorder %s470_s22, %s470_s22 }
  0x3b   :  { %358 = vmatprep.subr.bf16.mxu1 %v503_v0  ;;  %v397_v15 = vld [vmem:[#allocation8 + $0x28] sm:$0xff]   ;;  %v398_v16 = vld [vmem:[#allocation8 + $0x30] sm:$0xff]   ;;  %v399_v17 = vld [vmem:[#allocation8 + $0x38] sm:$0xff]  }
  0x3c   :  { %p477_p13 = por %p476_p12, %p475_p11 }
  0x3d   :  { %339 = vmatpush3.bf16.msra.mxu0 %v385_v2 }
  0x3e   :  { %340 = vmatprep.subr.bf16.mxu0 %v503_v0  ;;  %359 = vmatpush3.bf16.msra.mxu1 %v393_v11  ;;  %p478_p0 = pnand %p477_p13, %p471_p10 }
  0x3f   :  { %360 = vmatprep.subr.bf16.mxu1 %v503_v0 }
  0x41   :  { %341 = vmatpush3.bf16.msra.mxu0 %v386_v3 }
  0x42   :  { %342 = vmatprep.subr.bf16.mxu0 %v503_v0  ;;  %361 = vmatpush3.bf16.msra.mxu1 %v394_v12 }
  0x43   :  { %362 = vmatprep.subr.bf16.mxu1 %v503_v0 }
  0x45   :  { %343 = vmatpush3.bf16.msra.mxu0 %v387_v4 }
  0x46   :  { %344 = vmatprep.subr.bf16.mxu0 %v503_v0  ;;  %363 = vmatpush3.bf16.msra.mxu1 %v395_v13 }
  0x47   :  { %364 = vmatprep.subr.bf16.mxu1 %v503_v0 }
  0x49   :  { %345 = vmatpush3.bf16.msra.mxu0 %v388_v5 }
  0x4a   :  { %346 = vmatprep.subr.bf16.mxu0 %v503_v0  ;;  %365 = vmatpush3.bf16.msra.mxu1 %v396_v14 }
  0x4b   :  { %366 = vmatprep.subr.bf16.mxu1 %v503_v0 }
  0x4d   :  { %347 = vmatpush3.bf16.msra.mxu0 %v389_v6 }
  0x4e   :  { %348 = vmatprep.subr.bf16.mxu0 %v503_v0  ;;  %367 = vmatpush3.bf16.msra.mxu1 %v397_v15 }
  0x4f   :  { %368 = vmatprep.subr.bf16.mxu1 %v503_v0 }
  0x51   :  { %349 = vmatpush3.bf16.msra.mxu0 %v390_v7 }
  0x52   :  { %350 = vmatprep.subr.bf16.mxu0 %v503_v0  ;;  %369 = vmatpush3.bf16.msra.mxu1 %v398_v16 }
  0x53   :  { %370 = vmatprep.subr.bf16.mxu1 %v503_v0 }
  0x55   :  { %351 = vmatpush3.bf16.msra.mxu0 %v391_v8 }
  0x56   :  { %371 = vmatpush3.bf16.msra.mxu1 %v399_v17 }
  0x58   :  { %353 = vmatmul.mubr.bf16.vlgmr.msra.gmra.mrb[0].mxu0 %v60_v9 }
 0x12b   :  { %v159_v18 = vpop.f32.mrb[0].mxu0 }
 0x12c   :  { %v309_v19 = vmul.f32 -1.442695, %v159_v18  ;;  %v354_v20 = vpop.f32.mrb[1].mxu0 }
 0x12d   :  { %v162_v21 = vpop.f32.mrb[2].mxu0 }
 0x12e   :  { %400 = vpow2.f32 %v309_v19  ;;  %v355_v22 = vpop.f32.mrb[3].mxu0 }
 0x138   :  { %v401_v23 = vpop.eup %400 }
 0x139   :  { %v168_v24 = vadd.f32 1.0, %v401_v23 }
 0x13b   :  { %402 = vrcp.f32 %v168_v24 }
 0x145   :  { %v403_v25 = vpop.eup %402 }
 0x146   :  { %v171_v26 = vmul.f32 %v403_v25, %v159_v18 }
 0x148   :  { %v173_v27 = vpack.c.bf16 %v171_v26, %v171_v26 }
 0x14a   :  { %373 = vmatmul.mubr.bf16.vlgmr.msra.gmra.mrb[0].mxu1 %v173_v27 }
 0x21d   :  { %v272_v28 = vpop.f32.mrb[0].mxu1 }
 0x21e   :  { %284 = vst [vmem:[#allocation9] sm:$0xff] %v272_v28  ;;  %v374_v29 = vpop.f32.mrb[1].mxu1 }
 0x21f   :  { %v275_v30 = vpop.f32.mrb[2].mxu1 }
 0x220   :  { %481 = shalt.err (!%p478_p0)
}
 0x221   :  { %s482_s25 = scalar_lea.hbm %s583_s3, 128 }
 0x222   :  { %p483_p1 = scmp.ne.s32.totalorder %s583_s3, %s482_s25  ;;  %p486_p2 = scmp.lt.u32.totalorder %s482_s25, %s583_s3 }
 0x224   :  { %p488_p3 = pnand %p486_p2, %p483_p1 }
 0x226   :  { %491 = shalt.err (!%p488_p3)
}
 0x227   :  { %294 = dma.vmem_to_hbm [thread:$0]  %s292_s21, 128, %s583_s3, [#allocation5]   ;;  %v375_v31 = vpop.f32.mrb[3].mxu1 }
 0x228   :  { %496 = dma.done.wait [#allocation5], 128  }
 0x229   :  { %497 = vsyncadd [#allocation5], 4294967168 }
 0x22a   :  { %298 = vsyncpa [#allocation4], 1 }
 0x22b   :  { %299 = vsyncpa [#allocation7], 1 }
 0x22c   :  { %300 = vsyncpa [#allocation5], 1 }

// kernel: tpu_custom_call.1
= control target key start
LH: loop header
LB: loop body
LE: loop exit
PB: predicated region body
PF: predicated region fallthrough
CT: control target
= control target key end

     0   :  { %8 = vsyncpa [#allocation4], 0  ;;  %s580_s0 = inlined_call_operand.hbm [shape: bf16[8,128], index: 0, kind: input, shape index: {}]   ;;  %s581_s1 = inlined_call_operand.hbm [shape: bf16[128,128], index: 1, kind: input, shape index: {}]   ;;  %s582_s2 = inlined_call_operand.hbm [shape: bf16[128,128], index: 2, kind: input, shape index: {}]   ;;  %s583_s3 = inlined_call_operand.hbm [shape: f32[8,128], index: 3, kind: output, shape index: {}]  }
   0x1   :  { %9 = vsyncpa [#allocation7], 0 }
   0x2   :  { %10 = vsyncpa [#allocation5], 0  ;;  %s498_s12 = smov [#allocation6]   ;;  %s404_s16 = scalar_lea.hbm %s581_s1, 1024 }
   0x3   :  { %s26_s13 = sshll.u32 %s498_s12, 4  ;;  %p405_p0 = scmp.ne.s32.totalorder %s581_s1, %s404_s16  ;;  %s27_s13 = int_to_ptr.vmem [resolvable:$true] %s26_s13 }
   0x4   :  { %p408_p1 = scmp.lt.u32.totalorder %s404_s16, %s581_s1 }
   0x6   :  { %p410_p2 = pnand %p408_p1, %p405_p0 }
   0x8   :  { %413 = shalt.err (!%p410_p2)
}
   0x9   :  { %s414_s21 = scalar_lea.vmem %s27_s13, 1024  ;;  %p419_p4 = scmp.lt.s32.totalorder %s27_s13, %s27_s13 }
   0xa   :  { %p415_p3 = scmp.ne.s32.totalorder %s27_s13, %s414_s21  ;;  %p420_p5 = scmp.lt.s32.totalorder %s414_s21, %s414_s21 }
   0xc   :  { %p421_p6 = por %p420_p5, %p419_p4 }
   0xe   :  { %p422_p7 = pnand %p421_p6, %p415_p3 }
  0x10   :  { %425 = shalt.err (!%p422_p7)
}
  0x11   :  { %s499_s22 = smov 64   ;;  %s500_s23 = smov 4  }
  0x12   :  { %32 = dma.hbm_to_vmem [thread:$0]  %s581_s1, 1024, %s27_s13, [#allocation7], %s499_s22, %s499_s22, %s500_s23  }
  0x13   :  { %s501_s26 = smov [#allocation3]   ;;  %s502_s28 = smov [#allocation8]  }
  0x14   :  { %s17_s27 = sshll.u32 %s501_s26, 4  ;;  %s38_s29 = sshll.u32 %s502_s28, 4  ;;  %s18_s27 = int_to_ptr.vmem [resolvable:$true] %s17_s27  ;;  %s39_s29 = int_to_ptr.vmem [resolvable:$true] %s38_s29 }
  0x15   :  { %s426_s5 = scalar_lea.hbm %s580_s0, 64 }
  0x16   :  { %p427_p8 = scmp.ne.s32.totalorder %s580_s0, %s426_s5  ;;  %p430_p9 = scmp.lt.u32.totalorder %s426_s5, %s580_s0 }
  0x18   :  { %p432_p10 = pnand %p430_p9, %p427_p8 }
  0x1a   :  { %435 = shalt.err (!%p432_p10)
}
  0x1b   :  { %s436_s1 = scalar_lea.vmem %s18_s27, 64  ;;  %p441_p12 = scmp.lt.s32.totalorder %s18_s27, %s18_s27 }
  0x1c   :  { %p437_p11 = scmp.ne.s32.totalorder %s18_s27, %s436_s1  ;;  %p442_p13 = scmp.lt.s32.totalorder %s436_s1, %s436_s1 }
  0x1e   :  { %p443_p0 = por %p442_p13, %p441_p12 }
  0x20   :  { %p444_p1 = pnand %p443_p0, %p437_p11 }
  0x22   :  { %447 = shalt.err (!%p444_p1)
}
  0x23   :  { %20 = dma.hbm_to_vmem [thread:$0]  %s580_s0, 64, %s18_s27, [#allocation4]  }
  0x24   :  { %s448_s14 = scalar_lea.hbm %s582_s2, 1024 }
  0x25   :  { %p449_p2 = scmp.ne.s32.totalorder %s582_s2, %s448_s14  ;;  %p452_p3 = scmp.lt.u32.totalorder %s448_s14, %s582_s2 }
  0x27   :  { %p454_p4 = pnand %p452_p3, %p449_p2 }
  0x29   :  { %457 = shalt.err (!%p454_p4)
}
  0x2a   :  { %s458_s19 = scalar_lea.vmem %s39_s29, 1024  ;;  %p463_p6 = scmp.lt.s32.totalorder %s39_s29, %s39_s29 }
  0x2b   :  { %p459_p5 = scmp.ne.s32.totalorder %s39_s29, %s458_s19  ;;  %p464_p7 = scmp.lt.s32.totalorder %s458_s19, %s458_s19 }
  0x2d   :  { %p465_p8 = por %p464_p7, %p463_p6 }
  0x2f   :  { %p466_p9 = pnand %p465_p8, %p459_p5 }
  0x31   :  { %469 = shalt.err (!%p466_p9)
}
  0x32   :  { %44 = dma.hbm_to_vmem [thread:$0]  %s582_s2, 1024, %s39_s29, [#allocation7], %s499_s22, %s499_s22, %s500_s23  }
  0x33   :  { %492 = dma.done.wait [#allocation4], 64  }
  0x34   :  { %493 = vsyncadd [#allocation4], 4294967232 }
  0x35   :  { %494 = dma.done.wait [#allocation7], 2048  }
  0x36   :  { %495 = vsyncadd [#allocation7], 4294965248  ;;  %v503_v0 = vmov 0.0   ;;  %vm504_vm0 = vmmov 0   ;;  %v384_v1 = vld [vmem:[#allocation6] sm:$0xff]   ;;  %v385_v2 = vld [vmem:[#allocation6 + $0x8] sm:$0xff]  }
  0x37   :  { %336 = vmatprep.subr.bf16.mxu0 %v503_v0  ;;  %352 = vmatprep.mubr.msk.bf16.mxu0 %vm504_vm0, %v503_v0  ;;  %v386_v3 = vld [vmem:[#allocation6 + $0x10] sm:$0xff]   ;;  %v387_v4 = vld [vmem:[#allocation6 + $0x18] sm:$0xff]   ;;  %v388_v5 = vld [vmem:[#allocation6 + $0x20] sm:$0xff]   ;;  %s505_s2 = smov [#allocation9]  }
  0x38   :  { %356 = vmatprep.subr.bf16.mxu1 %v503_v0  ;;  %372 = vmatprep.mubr.msk.bf16.mxu1 %vm504_vm0, %v503_v0  ;;  %v389_v6 = vld [vmem:[#allocation6 + $0x28] sm:$0xff]   ;;  %v390_v7 = vld [vmem:[#allocation6 + $0x30] sm:$0xff]   ;;  %v391_v8 = vld [vmem:[#allocation6 + $0x38] sm:$0xff]   ;;  %s291_s21 = sshll.u32 %s505_s2, 4  ;;  %s292_s21 = int_to_ptr.vmem [resolvable:$true] %s291_s21 }
  0x39   :  { %337 = vmatpush3.bf16.msra.mxu0 %v384_v1  ;;  %v60_v9 = vld [vmem:[#allocation3] sm:$0xf]  ;;  %v392_v10 = vld [vmem:[#allocation8] sm:$0xff]   ;;  %v393_v11 = vld [vmem:[#allocation8 + $0x8] sm:$0xff]   ;;  %s470_s22 = scalar_lea.vmem %s292_s21, 128  ;;  %p475_p11 = scmp.lt.s32.totalorder %s292_s21, %s292_s21 }
  0x3a   :  { %338 = vmatprep.subr.bf16.mxu0 %v503_v0  ;;  %357 = vmatpush3.bf16.msra.mxu1 %v392_v10  ;;  %v394_v12 = vld [vmem:[#allocation8 + $0x10] sm:$0xff]   ;;  %v395_v13 = vld [vmem:[#allocation8 + $0x18] sm:$0xff]   ;;  %v396_v14 = vld [vmem:[#allocation8 + $0x20] sm:$0xff]   ;;  %p471_p10 = scmp.ne.s32.totalorder %s292_s21, %s470_s22  ;;  %p476_p12 = scmp.lt.s32.totalorder %s470_s22, %s470_s22 }
  0x3b   :  { %358 = vmatprep.subr.bf16.mxu1 %v503_v0  ;;  %v397_v15 = vld [vmem:[#allocation8 + $0x28] sm:$0xff]   ;;  %v398_v16 = vld [vmem:[#allocation8 + $0x30] sm:$0xff]   ;;  %v399_v17 = vld [vmem:[#allocation8 + $0x38] sm:$0xff]  }
  0x3c   :  { %p477_p13 = por %p476_p12, %p475_p11 }
  0x3d   :  { %339 = vmatpush3.bf16.msra.mxu0 %v385_v2 }
  0x3e   :  { %340 = vmatprep.subr.bf16.mxu0 %v503_v0  ;;  %359 = vmatpush3.bf16.msra.mxu1 %v393_v11  ;;  %p478_p0 = pnand %p477_p13, %p471_p10 }
  0x3f   :  { %360 = vmatprep.subr.bf16.mxu1 %v503_v0 }
  0x41   :  { %341 = vmatpush3.bf16.msra.mxu0 %v386_v3 }
  0x42   :  { %342 = vmatprep.subr.bf16.mxu0 %v503_v0  ;;  %361 = vmatpush3.bf16.msra.mxu1 %v394_v12 }
  0x43   :  { %362 = vmatprep.subr.bf16.mxu1 %v503_v0 }
  0x45   :  { %343 = vmatpush3.bf16.msra.mxu0 %v387_v4 }
  0x46   :  { %344 = vmatprep.subr.bf16.mxu0 %v503_v0  ;;  %363 = vmatpush3.bf16.msra.mxu1 %v395_v13 }
  0x47   :  { %364 = vmatprep.subr.bf16.mxu1 %v503_v0 }
  0x49   :  { %345 = vmatpush3.bf16.msra.mxu0 %v388_v5 }
  0x4a   :  { %346 = vmatprep.subr.bf16.mxu0 %v503_v0  ;;  %365 = vmatpush3.bf16.msra.mxu1 %v396_v14 }
  0x4b   :  { %366 = vmatprep.subr.bf16.mxu1 %v503_v0 }
  0x4d   :  { %347 = vmatpush3.bf16.msra.mxu0 %v389_v6 }
  0x4e   :  { %348 = vmatprep.subr.bf16.mxu0 %v503_v0  ;;  %367 = vmatpush3.bf16.msra.mxu1 %v397_v15 }
  0x4f   :  { %368 = vmatprep.subr.bf16.mxu1 %v503_v0 }
  0x51   :  { %349 = vmatpush3.bf16.msra.mxu0 %v390_v7 }
  0x52   :  { %350 = vmatprep.subr.bf16.mxu0 %v503_v0  ;;  %369 = vmatpush3.bf16.msra.mxu1 %v398_v16 }
  0x53   :  { %370 = vmatprep.subr.bf16.mxu1 %v503_v0 }
  0x55   :  { %351 = vmatpush3.bf16.msra.mxu0 %v391_v8 }
  0x56   :  { %371 = vmatpush3.bf16.msra.mxu1 %v399_v17 }
  0x58   :  { %353 = vmatmul.mubr.bf16.vlgmr.msra.gmra.mrb[0].mxu0 %v60_v9 }
 0x12b   :  { %v159_v18 = vpop.f32.mrb[0].mxu0 }
 0x12c   :  { %v309_v19 = vmul.f32 -1.442695, %v159_v18  ;;  %v354_v20 = vpop.f32.mrb[1].mxu0 }
 0x12d   :  { %v162_v21 = vpop.f32.mrb[2].mxu0 }
 0x12e   :  { %400 = vpow2.f32 %v309_v19  ;;  %v355_v22 = vpop.f32.mrb[3].mxu0 }
 0x138   :  { %v401_v23 = vpop.eup %400 }
 0x139   :  { %v168_v24 = vadd.f32 1.0, %v401_v23 }
 0x13b   :  { %402 = vrcp.f32 %v168_v24 }
 0x145   :  { %v403_v25 = vpop.eup %402 }
 0x146   :  { %v171_v26 = vmul.f32 %v403_v25, %v159_v18 }
 0x148   :  { %v173_v27 = vpack.c.bf16 %v171_v26, %v171_v26 }
 0x14a   :  { %373 = vmatmul.mubr.bf16.vlgmr.msra.gmra.mrb[0].mxu1 %v173_v27 }
 0x21d   :  { %v272_v28 = vpop.f32.mrb[0].mxu1 }
 0x21e   :  { %284 = vst [vmem:[#allocation9] sm:$0xff] %v272_v28  ;;  %v374_v29 = vpop.f32.mrb[1].mxu1 }
 0x21f   :  { %v275_v30 = vpop.f32.mrb[2].mxu1 }
 0x220   :  { %481 = shalt.err (!%p478_p0)
}
 0x221   :  { %s482_s25 = scalar_lea.hbm %s583_s3, 128 }
 0x222   :  { %p483_p1 = scmp.ne.s32.totalorder %s583_s3, %s482_s25  ;;  %p486_p2 = scmp.lt.u32.totalorder %s482_s25, %s583_s3 }
 0x224   :  { %p488_p3 = pnand %p486_p2, %p483_p1 }
 0x226   :  { %491 = shalt.err (!%p488_p3)
}
 0x227   :  { %294 = dma.vmem_to_hbm [thread:$0]  %s292_s21, 128, %s583_s3, [#allocation5]   ;;  %v375_v31 = vpop.f32.mrb[3].mxu1 }
 0x228   :  { %496 = dma.done.wait [#allocation5], 128  }
 0x229   :  { %497 = vsyncadd [#allocation5], 4294967168 }
 0x22a   :  { %298 = vsyncpa [#allocation4], 1 }
 0x22b   :  { %299 = vsyncpa [#allocation7], 1 }
 0x22c   :  { %300 = vsyncpa [#allocation5], 1 }

</bundles_post_ra>
